<compile_context>
chip_gen: v6e
topology: v6e:2x2x1
jax: 0.10.0
libtpu: 0.0.40
codegen_flags: <defaults>
</compile_context>

<pallas_src>
import functools

import jax
import jax.numpy as jnp
from jax import lax
from jax.experimental import pallas as pl
from jax.experimental.pallas import tpu as pltpu

_NEG_INF = -1e30  # finite "minus infinity": masked lanes never make NaN/Inf


def _ce_kernel(logits_ref, gt_ref, out_ref, *scratch, n_rows, n_cls, tn, tc,
               nc, mask_rows, simple_cls):
    # logits_ref: (1, tn, tc) block of pred for (task t, batch-tile b, class-tile c)
    # gt_ref:     (1, tn, 1) int32 targets for (t, b)   (constant across c)
    # out_ref:    (1, 1, 8, 128) f32 partial row-loss sum for (t, b)
    # scratch (only when nc > 1): m/s/tl per-lane (tn, 128) online-LSE state
    b = pl.program_id(1)
    c = pl.program_id(2)

    tgt = gt_ref[0]                                   # (tn, 1) int32

    if simple_cls:
        # Single class tile with tc == n_cls (possibly not 128-aligned):
        # plain row-wise LSE; cross-lane reduces are fine at this size.
        logits = logits_ref[0].astype(jnp.float32)                     # (tn, C)
        m_row = jnp.max(logits, axis=-1, keepdims=True)
        s_row = jnp.sum(jnp.exp(logits - m_row), axis=-1, keepdims=True)
        col = lax.broadcasted_iota(jnp.int32, logits.shape, 1)         # constant
        tl_row = jnp.sum(jnp.where(col == tgt, logits, 0.0),
                         axis=-1, keepdims=True)
    else:
        multi = nc > 1
        if multi:
            m_ref, s_ref, tl_ref = scratch
        k_chunks = tc // 128
        lane = lax.broadcasted_iota(jnp.int32, (tn, 128), 1)           # constant
        col0 = c * tc                                                  # scalar
        # Valid width of the LAST class tile (static python int).
        last_width = n_cls - (nc - 1) * tc

        # ---- pass A: load/cast 128-lane chunks, mask ragged tail, lane max ----
        chunks = []
        tile_max = None
        for k in range(k_chunks):
            ch = logits_ref[0, :, k * 128:(k + 1) * 128].astype(jnp.float32)
            if (k + 1) * 128 > last_width:   # static: only chunks that can be ragged
                ch = jnp.where(lane < (n_cls - col0 - k * 128), ch, _NEG_INF)
            chunks.append(ch)
            tile_max = ch if tile_max is None else jnp.maximum(tile_max, ch)

        # ---- combine with running per-lane state (online LSE over class tiles) ----
        if multi:
            @pl.when(c == 0)
            def _init():
                m_ref[...] = jnp.full((tn, 128), _NEG_INF, jnp.float32)
                s_ref[...] = jnp.zeros((tn, 128), jnp.float32)
                tl_ref[...] = jnp.zeros((tn, 128), jnp.float32)

            m_old = m_ref[...]
            m_new = jnp.maximum(m_old, tile_max)
            s_acc = s_ref[...] * jnp.exp(m_old - m_new)
            tl_acc = tl_ref[...]
        else:
            # Single class tile: no online rescale, no scratch.
            m_new = tile_max
            s_acc = jnp.zeros((tn, 128), jnp.float32)
            tl_acc = jnp.zeros((tn, 128), jnp.float32)

        # ---- pass B: per-lane exp-sum + target pick-up (pure VPU/EUP, no XLU) ----
        tgt_local = tgt - col0                                         # (tn, 1)
        for k in range(k_chunks):
            ch = chunks[k]
            s_acc = s_acc + jnp.exp(ch - m_new)
            tl_acc = tl_acc + jnp.where(lane == (tgt_local - k * 128), ch, 0.0)

        if multi:
            m_ref[...] = m_new
            s_ref[...] = s_acc
            tl_ref[...] = tl_acc

    # ---- finalize: the only cross-lane reduces, once per (task, batch-tile) ----
    def _finalize():
        if simple_cls:
            m_r, s_r, tl_r = m_row, s_row, tl_row
        else:
            m_r = jnp.max(m_new, axis=-1, keepdims=True)                   # (tn, 1)
            s_r = jnp.sum(s_acc * jnp.exp(m_new - m_r), axis=-1, keepdims=True)
            tl_r = jnp.sum(tl_acc, axis=-1, keepdims=True)
        row_loss = m_r + jnp.log(s_r) - tl_r                               # (tn, 1)
        if mask_rows:
            row_idx = lax.broadcasted_iota(jnp.int32, (tn, 1), 0) + b * tn
            row_loss = jnp.where(row_idx < n_rows, row_loss, 0.0)
        total = jnp.sum(row_loss, axis=0, keepdims=True)                   # (1, 1)
        out_ref[0, 0] = jnp.broadcast_to(total, (8, 128))

    if nc == 1:
        _finalize()
    else:
        pl.when(c == nc - 1)(_finalize)


def _cdiv(a, b):
    return -(-a // b)


def _round_up(x, m):
    return _cdiv(x, m) * m


def multi_task_cross_entropy(pred, gt, *, tn_max=256, tc_max=4096,
                             vmem_limit_bytes=48 * 1024 * 1024):
    """pred: (T, N, C) float; gt: (T, N) int. Returns {task: loss, 'total': sum}."""
    T, N, C = pred.shape
    assert tn_max % 32 == 0 and tc_max % 128 == 0

    # Batch tiling: use the full dim when it fits (no ragged tail), else tile.
    if N <= tn_max:
        tn, nb = N, 1
    else:
        tn, nb = tn_max, _cdiv(N, tn_max)
    mask_rows = (nb * tn != N)

    # Class tiling: a non-128-multiple C that fits one tile takes the simple
    # path (block last dim == C exactly); otherwise stream 128-aligned tiles
    # and mask any ragged tail in-kernel (no HBM-level jnp.pad copies).
    simple_cls = (C % 128 != 0) and (C <= tc_max)
    if simple_cls:
        tc, nc = C, 1
    else:
        tc = min(_round_up(C, 128), tc_max)
        nc = _cdiv(C, tc)

    gt3 = gt.astype(jnp.int32).reshape(T, N, 1)

    itemsize = jnp.dtype(pred.dtype).itemsize
    cost = pl.CostEstimate(
        flops=6 * T * N * C,
        transcendentals=T * N * C,
        bytes_accessed=pred.size * itemsize + gt3.size * 4 + T * nb * 8 * 128 * 4,
    )

    kernel = functools.partial(
        _ce_kernel, n_rows=N, n_cls=C, tn=tn, tc=tc, nc=nc,
        mask_rows=mask_rows, simple_cls=simple_cls)
    scratch = ([pltpu.VMEM((tn, 128), jnp.float32)] * 3) if nc > 1 else []

    slab = pl.pallas_call(
        kernel,
        out_shape=jax.ShapeDtypeStruct((T, nb, 8, 128), jnp.float32),
        grid_spec=pltpu.PrefetchScalarGridSpec(
            num_scalar_prefetch=0,
            grid=(T, nb, nc),
            in_specs=[
                pl.BlockSpec((1, tn, tc), lambda t, b, c: (t, b, c)),
                pl.BlockSpec((1, tn, 1), lambda t, b, c: (t, b, 0)),
            ],
            out_specs=pl.BlockSpec((1, 1, 8, 128), lambda t, b, c: (t, b, 0, 0)),
            scratch_shapes=scratch,
        ),
        compiler_params=pltpu.CompilerParams(
            dimension_semantics=("parallel", "parallel", "arbitrary"),
            vmem_limit_bytes=vmem_limit_bytes,
        ),
        cost_estimate=cost,
    )(pred, gt3)

    per_task = jnp.sum(slab[:, :, 0, 0], axis=1) * jnp.float32(1.0 / N)
    out = {t: per_task[t] for t in range(T)}          # dict keys match module API
    out["total"] = jnp.sum(per_task)
    return out


def _reference(pred, gt):
    logp = jax.nn.log_softmax(pred.astype(jnp.float32), axis=-1)
    nll = -jnp.take_along_axis(logp, gt[..., None].astype(jnp.int32), axis=-1)[..., 0]
    per_task = jnp.mean(nll, axis=-1)
    return per_task, jnp.sum(per_task)


def _check(out, pred, gt, tol):
    ref_pt, ref_tot = _reference(pred, gt)
    for t in range(pred.shape[0]):
        assert jnp.allclose(out[t], ref_pt[t], atol=tol, rtol=tol), (
            f"task {t}: {out[t]} vs {ref_pt[t]}")
    assert jnp.allclose(out["total"], ref_tot, atol=tol, rtol=tol), (
        f"total: {out['total']} vs {ref_tot}")


if __name__ == "__main__":
    keys = jax.random.split(jax.random.PRNGKey(0), 8)

    # Case 1: module-sized toy problem -> simple single-tile path (C not 128-aligned).
    T, N, C = 3, 8, 16
    pred1 = jax.random.normal(keys[0], (T, N, C), dtype=jnp.float32)
    gt1 = jax.random.randint(keys[1], (T, N), 0, C, dtype=jnp.int32)
    out1 = multi_task_cross_entropy(pred1, gt1)
    jax.block_until_ready(out1["total"])
    _check(out1, pred1, gt1, 1e-4)

    # Case 2: forces batch tiling + multi class tiles + ragged row/class tails
    # (online-LSE scratch path, in-kernel masking, no wrapper padding).
    T2, N2, C2 = 2, 72, 200
    pred2 = jax.random.normal(keys[2], (T2, N2, C2), dtype=jnp.float32)
    gt2 = jax.random.randint(keys[3], (T2, N2), 0, C2, dtype=jnp.int32)
    out2 = multi_task_cross_entropy(pred2, gt2, tn_max=32, tc_max=128)
    jax.block_until_ready(out2["total"])
    _check(out2, pred2, gt2, 1e-4)

    # Case 3: 128-aligned single-tile chunked path (no scratch, no masks), bf16.
    T3, N3, C3 = 2, 16, 256
    pred3 = jax.random.normal(keys[4], (T3, N3, C3), dtype=jnp.float32).astype(
        jnp.bfloat16)
    gt3 = jax.random.randint(keys[5], (T3, N3), 0, C3, dtype=jnp.int32)
    out3 = multi_task_cross_entropy(pred3, gt3)
    jax.block_until_ready(out3["total"])
    _check(out3, pred3, gt3, 1e-3)

    print("KERNEL_OK")
</pallas_src>

<mosaic_0001>
module attributes {stable_mosaic.version = 11 : i64} {
  func.func @_ce_kernel(%arg0: i32, %arg1: i32, %arg2: i32, %arg3: memref<1x8x16xf32, #tpu.memory_space<vmem>>, %arg4: memref<1x8x1xi32, #tpu.memory_space<vmem>>, %arg5: memref<1x1x8x128xf32, #tpu.memory_space<vmem>>) attributes {dimension_semantics = [#tpu.dimension_semantics<parallel>, #tpu.dimension_semantics<parallel>, #tpu.dimension_semantics<arbitrary>], iteration_bounds = array<i64: 3, 1, 1>, scalar_prefetch = 0 : i64, scratch_operands = 0 : i64, tpu.core_type = #tpu.core_type<tc>, window_params = [{transform_indices = @transform_0, window_bounds = array<i64: 1, 8, 16>}, {transform_indices = @transform_1, window_bounds = array<i64: 1, 8, 1>}, {transform_indices = @transform_2, window_bounds = array<i64: 1, 1, 8, 128>}]} {
    %c0 = arith.constant 0 : index
    %c0_0 = arith.constant 0 : index
    %c0_1 = arith.constant 0 : index
    %0 = vector.load %arg4[%c0, %c0_0, %c0_1] : memref<1x8x1xi32, #tpu.memory_space<vmem>>, vector<1x8x1xi32>
    %1 = vector.shape_cast %0 : vector<1x8x1xi32> to vector<8x1xi32>
    %c0_2 = arith.constant 0 : index
    %c0_3 = arith.constant 0 : index
    %c0_4 = arith.constant 0 : index
    %2 = vector.load %arg3[%c0_2, %c0_3, %c0_4] : memref<1x8x16xf32, #tpu.memory_space<vmem>>, vector<1x8x16xf32>
    %3 = vector.shape_cast %2 : vector<1x8x16xf32> to vector<8x16xf32>
    %cst = arith.constant dense<0xFF800000> : vector<8xf32>
    %4 = vector.multi_reduction <maximumf>, %3, %cst [1] : vector<8x16xf32> to vector<8xf32>
    %5 = vector.shape_cast %4 : vector<8xf32> to vector<8x1xf32>
    %6 = vector.broadcast %5 : vector<8x1xf32> to vector<8x16xf32>
    %7 = arith.subf %3, %6 : vector<8x16xf32>
    %8 = math.exp %7 : vector<8x16xf32>
    %cst_5 = arith.constant dense<0.000000e+00> : vector<8xf32>
    %9 = vector.multi_reduction <add>, %8, %cst_5 [1] : vector<8x16xf32> to vector<8xf32>
    %10 = vector.shape_cast %9 : vector<8xf32> to vector<8x1xf32>
    %11 = tpu.iota {dimensions = array<i32: 1>} : vector<8x16xi32>
    %12 = vector.broadcast %1 : vector<8x1xi32> to vector<8x16xi32>
    %13 = arith.cmpi eq, %11, %12 : vector<8x16xi32>
    %cst_6 = arith.constant 0.000000e+00 : f32
    %14 = vector.broadcast %cst_6 : f32 to vector<8x16xf32>
    %15 = arith.select %13, %3, %14 : vector<8x16xi1>, vector<8x16xf32>
    %cst_7 = arith.constant dense<0.000000e+00> : vector<8xf32>
    %16 = vector.multi_reduction <add>, %15, %cst_7 [1] : vector<8x16xf32> to vector<8xf32>
    %17 = vector.shape_cast %16 : vector<8xf32> to vector<8x1xf32>
    %18 = math.log %10 : vector<8x1xf32>
    %19 = arith.addf %5, %18 : vector<8x1xf32>
    %20 = arith.subf %19, %17 : vector<8x1xf32>
    %cst_8 = arith.constant dense<0.000000e+00> : vector<1xf32>
    %21 = vector.multi_reduction <add>, %20, %cst_8 [0] : vector<8x1xf32> to vector<1xf32>
    %22 = vector.shape_cast %21 : vector<1xf32> to vector<1x1xf32>
    %23 = vector.shape_cast %22 : vector<1x1xf32> to vector<1x1xf32>
    %24 = vector.broadcast %23 : vector<1x1xf32> to vector<8x128xf32>
    %c0_9 = arith.constant 0 : index
    %c0_10 = arith.constant 0 : index
    %c0_11 = arith.constant 0 : index
    %c0_12 = arith.constant 0 : index
    %25 = vector.load %arg5[%c0_9, %c0_10, %c0_11, %c0_12] : memref<1x1x8x128xf32, #tpu.memory_space<vmem>>, vector<1x1x8x128xf32>
    %26 = vector.shape_cast %25 : vector<1x1x8x128xf32> to vector<8x128xf32>
    %27 = vector.shape_cast %24 : vector<8x128xf32> to vector<1x1x8x128xf32>
    tpu.vector_store %arg5[%c0_9, %c0_10, %c0_11, %c0_12], %27 {strides = array<i32>} : memref<1x1x8x128xf32, #tpu.memory_space<vmem>>, vector<1x1x8x128xf32>,
    return
  }
  func.func @transform_0(%arg0: i32, %arg1: i32, %arg2: i32) -> (i32, i32, i32) {
    %c0_i32 = arith.constant 0 : i32
    return %arg0, %arg1, %arg2 : i32, i32, i32
  }
  func.func @transform_1(%arg0: i32, %arg1: i32, %arg2: i32) -> (i32, i32, i32) {
    %c0_i32 = arith.constant 0 : i32
    %c0_i32_0 = arith.constant 0 : i32
    return %arg0, %arg1, %c0_i32 : i32, i32, i32
  }
  func.func @transform_2(%arg0: i32, %arg1: i32, %arg2: i32) -> (i32, i32, i32, i32) {
    %c0_i32 = arith.constant 0 : i32
    %c0_i32_0 = arith.constant 0 : i32
    %c0_i32_1 = arith.constant 0 : i32
    return %arg0, %arg1, %c0_i32, %c0_i32_0 : i32, i32, i32, i32
  }
}

</mosaic_0001>

<bundles_post_ra>
// kernel: tpu_custom_call.1
= control target key start
LH: loop header
LB: loop body
LE: loop exit
PB: predicated region body
PF: predicated region fallthrough
CT: control target
= control target key end

     0   :  { %7 = vsyncpa [#allocation3], 0  ;;  %s623_s0 = inlined_call_operand.vmem [shape: f32[3,8,16], index: 0, kind: input, shape index: {}]   ;;  %s624_s1 = inlined_call_operand.vmem [shape: s32[3,8,1], index: 1, kind: input, shape index: {}]   ;;  %s625_s2 = inlined_call_operand.hbm [shape: f32[3,1,8,128], index: 2, kind: output, shape index: {}]  }
   0x1   :  { %9 = vsyncpa [#allocation3 + $0x1], 0  ;;  %s518_s9 = smov 0   ;;  %s520_s10 = smov 0  }
   0x2   :  { %s522_s11 = smov 0   ;;  %s524_s12 = smov 0  }
   0x3   :  { %s526_s13 = smov 0   ;;  %s528_s14 = smov 0  }
   0x4 LB: > { %s350_s15 = sadd.s32 4294967295, %s499_s14   ;;  %s351_s16 = sadd.s32 4294967294, %s499_s14   ;;  %s499_s14 = sphi %s528_s14, %s15_s14   ;;  %s495_s13 = sphi %s526_s13, %s632_s13   ;;  %s491_s12 = sphi %s524_s12, %s631_s12   ;;  %s487_s11 = sphi %s522_s11, %s630_s11   ;;  %s483_s10 = sphi %s520_s10, %s629_s10   ;;  %s479_s9 = sphi %s518_s9, %s628_s9  }
   0x5   : > { %s34_s17 = sadd.s32 1, %s495_s13  ;;  %s101_s18 = sadd.s32 1, %s487_s11 }
   0x6   : > { %p36_p0 = scmp.ge.s32.totalorder %s34_s17, 3  ;;  %p111_p1 = scmp.ne.s32.totalorder %s487_s11, %s483_s10 }
   0x7   : > { %p112_p2 = scmp.eq.s32.totalorder %s350_s15, 2  ;;  %p117_p3 = scmp.ne.s32.totalorder %s483_s10, %s479_s9 }
   0x8   : > { %s634_s17 = smov (%p36_p0, %s34_s17), 0  ;;  %p118_p5 = scmp.eq.s32.totalorder %s351_s16, 2 }
   0x9   : > { %p558_p4 = por %p112_p2, %p111_p1  ;;  %s96_s20 = ssub.s32 %s495_s13, %s634_s17 }
   0xa   : > { %p354_p6 = scmp.ge.s32.totalorder %s499_s14, 1  ;;  %p99_p7 = scmp.eq.s32.totalorder %s96_s20, 0 }
   0xb   : > { %p565_p8 = por %p118_p5, %p117_p3  ;;  %p159_p9 = scmp.lt.s32.totalorder %s499_s14, 4 }
   0xc   : > { %s571_s22 = scalar_select %p99_p7, %s487_s11, %s101_s18  }
   0xd   : > { %p160_p10 = pnand %p354_p6, %p159_p9 }
   0xe   : > { %p193_p11 = scmp.lt.s32.totalorder (!%p160_p10), %s491_s12, 2  ;;  %s190_s3 = sand.u32 (!%p160_p10), 1, %s483_s10  }
   0xf   : > { %163 = sbr.rel (%p160_p10) target bundleno = 366 (0x16e), region = 28  ;;  %s355_s4 = sshll.u32 (!%p160_p10), %s190_s3, 3 }
  0x10   : > { %s359_s5 = sshll.u32 (!%p160_p10), %s491_s12, 7  ;;  %s192_s6 = scalar_lea.vmem (!%p160_p10), [#allocation2], %s355_s4 }
  0x11   : > { %s258_s7 = sshll.u32 (!%p160_p10), %s192_s6, 4  ;;  %s256_s16 = scalar_lea.hbm (!%p160_p10), %s625_s2, %s359_s5  ;;  %s259_s7 = int_to_ptr.vmem [resolvable:$true] %s258_s7 }
  0x12   : > { %s244_s18 = scalar_lea.sflag (!%p160_p10), [#allocation3], %s190_s3  ;;  %s423_s20 = scalar_lea.vmem (!%p160_p10), %s259_s7, 128 }
  0x13   : > { %p424_p12 = scmp.ne.s32.totalorder (!%p160_p10), %s259_s7, %s423_s20 }
  0x14   : > { %v501_v0 = vmov 0   ;;  %s194_s23 = scalar_select %p193_p11, %s491_s12, 2  ;;  %vm212_vm0 = vcmask 130048   ;;  %v222_v7 = vlaneseq }
  0x15   : > { %418 = vset.pattern.permute.xlu0 %v501_v0  ;;  %p425_p13 = pnand %p424_p12, %p558_p4 }
  0x16   : > { %s356_s24 = sshll.u32 %s194_s23, 3  ;;  %v223_v8 = vand.u32 127, %v222_v7  ;;  %s502_s23 = smov [#allocation2]  }
  0x17   : > { %s202_s27 = scalar_lea.vmem %s623_s0, %s356_s24  ;;  %s209_s30 = scalar_lea.vmem %s624_s1, %s356_s24 }
  0x18   : > { %v211_v1 = vld [vmem:[%s202_s27] sm:$0xff]  ;;  %p426_p0 = pneg %p425_p13  ;;  %s427_s24 = sshll.u32 %s502_s23, 4  ;;  %s428_s24 = int_to_ptr.vmem [resolvable:$false] %s427_s24 }
  0x19   : > { %v213_v2 = vsel %vm212_vm0, %v211_v1, -inf  ;;  %v210_v3 = vld [vmem:[%s209_s30] sm:$0xff]  ;;  %s429_s12 = scalar_lea.vmem %s428_s24, 256  ;;  %p430_p1 = scmp.lt.s32.totalorder %s259_s7, %s428_s24 }
  0x1a   : > { %214 = vmax.xlane.f32.xlu0 %v213_v2  ;;  %p431_p2 = scmp.lt.s32.totalorder %s429_s12, %s423_s20 }
  0x1c   : > { %p432_p3 = por %p431_p2, %p430_p1 }
  0x1e   : > { %p433_p5 = pnand %p432_p3, %p426_p0 }
  0x30   : > { %225 = vperm.xlu0 %418, %v210_v3  }
  0xa3   : > { %v215_v4 = vpop.xlane.xlu0 %214 }
  0xa4   : > { %v216_v5 = vsub.f32 %v211_v1, %v215_v4 }
  0xa6   : > { %v217_v6 = vmul.f32 1.442695, %v216_v5 }
  0xa8   : > { %419 = vpow2.f32 %v217_v6 }
  0xab   : > { %v226_v9 = vpop.permute.xlu0 %225 }
  0xac   : > { %vm227_vm1 = vcmp.eq.s32.totalorder %v223_v8, %v226_v9 }
  0xad   : > { %v228_v11 = vsel %vm227_vm1, %v211_v1, 0.0 }
  0xae   : > { %v229_v13 = vsel %vm212_vm0, %v228_v11, 0.0 }
  0xb5   : > { %v420_v10 = vpop.eup %419 }
  0xb6   : > { %v219_v12 = vsel %vm212_vm0, %v420_v10, 0.0 }
  0xb7   : > { %220 = vadd.xlane.f32.xlu1 %v219_v12 }
  0xbb   : > { %230 = vadd.xlane.f32.xlu1 %v229_v13 }
 0x140   : > { %v221_v14 = vpop.xlane.xlu1 %220 }
 0x141   : > { %421 = vlog2.f32 %v221_v14 }
 0x144   : > { %v231_v17 = vpop.xlane.xlu1 %230 }
 0x14e   : > { %v422_v15 = vpop.eup %421 }
 0x14f   : > { %v233_v16 = vmul.f32 0.6931472, %v422_v15 }
 0x151   : > { %v234_v18 = vadd.f32 %v233_v16, %v215_v4 }
 0x153   : > { %v235_v19 = vsub.f32 %v234_v18, %v231_v17 }
 0x155   : > { %v236_v20 = vrot.slane %v235_v19, 4 }
 0x157   : > { %v237_v21 = vadd.f32 %v236_v20, %v235_v19 }
 0x159   : > { %v238_v22 = vrot.slane %v237_v21, 2 }
 0x15b   : > { %v239_v23 = vadd.f32 %v238_v22, %v237_v21 }
 0x15d   : > { %v240_v24 = vrot.slane %v239_v23, 1 }
 0x15f   : > { %v241_v25 = vadd.f32 %v240_v24, %v239_v23 }
 0x161   : > { %242 = vst [vmem:[%s192_s6] sm:$0xff] %v241_v25 }
 0x162   : > { %436 = shalt.err (!%p433_p5)
}
 0x163   : > { %s437_s25 = scalar_lea.hbm %s256_s16, 128  ;;  %s441_s28 = scalar_lea.hbm %s625_s2, 384 }
 0x164   : > { %p438_p6 = scmp.ne.s32.totalorder %s256_s16, %s437_s25  ;;  %p442_p10 = scmp.lt.s32.totalorder %s256_s16, %s625_s2 }
 0x165   : > { %p443_p11 = scmp.lt.s32.totalorder %s441_s28, %s437_s25 }
 0x166   : > { %p439_p7 = pnand %p438_p6, %p558_p4 }
 0x167   : > { %p444_p12 = por %p443_p11, %p442_p10 }
 0x168   : > { %p440_p9 = pneg %p439_p7 }
 0x16a   : > { %p445_p13 = pnand %p444_p12, %p440_p9 }
 0x16c   : > { %448 = shalt.err (!%p445_p13)
}
 0x16d   : > { %362 = dma.vmem_to_hbm [thread:$0]  (%p558_p4), %s259_s7, 128, %s256_s16, %s244_s18  }
 0x16e PF: > { %p368_p0 = scmp.ge.s32.totalorder %s499_s14, 2  ;;  %s270_s3 = sand.u32 1, %s479_s9  }
 0x16f   : > { %s271_s4 = scalar_lea.sflag [#allocation3], %s270_s3 }
 0x170   : > { %p365_p1 = pnand %p368_p0, %p565_p8 }
 0x172   : > { %p366_p2 = pneg %p365_p1 }
 0x174   : > { %474 = dma.done.wait (%p366_p2), %s271_s4, 128  }
 0x175   : > { %476 = vsyncadd (%p366_p2), %s271_s4, 4294967168  ;;  %s15_s14 = sadd.s32 1, %s499_s14   ;;  %s628_s9 = smov %s483_s10 }
 0x176   : > { %p12_p3 = scmp.ge.s32.totalorder %s15_s14, 5   ;;  %s629_s10 = smov %s487_s11 }
 0x177   : > { %s630_s11 = smov %s571_s22  ;;  %s631_s12 = smov %s495_s13 }
 0x178   : > { %s632_s13 = smov %s634_s17  ;;  %14 = sbr.rel (!%p12_p3) target bundleno = 4 (0x4), region = 66 }
 0x17d   :  { %276 = vsyncpa [#allocation3], 1 }
 0x17e   :  { %278 = vsyncpa [#allocation3 + $0x1], 1 }

</bundles_post_ra>
